<compile_context>
chip_gen: v7x
topology: tpu7x:2x2x1
jax: 0.10.0
libtpu: 0.0.40
codegen_flags: <defaults>
</compile_context>

<pallas_src>
import jax
import jax.numpy as jnp
from jax import lax
from jax.experimental import pallas as pl
from jax.experimental.pallas import tpu as pltpu

N_ATOMS = 8       # n_atoms (== sublane count of the packed slabs)
N_SPECIES = 4     # chemical species
HIDDEN = 32       # node feature width
A_PAIR = 0.5      # pair-potential amplitude
ALPHA = 1.2       # pair-potential decay
LANES = 128       # lane width of the packed slabs

# input-slab lane layout
POS_L = 0         # positions   [N, 3]      lanes 0:3
POST_L = 8        # positions.T [3, N]      lanes 8:16, sublanes 0:3
H0_L = 32         # W[species]+b1 [N, H]    lanes 32:64
W2_L = 64         # w2 readout row [1, H]   lanes 64:96, sublane 0
VOL_L = 96        # 1/(2V) scalar           element [0, 96]


# ---------------------------------------------------------------------------
# Fused kernel: node readout (VPU/EUP) + pair energy/forces/virial stress
# ---------------------------------------------------------------------------
def mace_fused_kernel(slab_ref, out_ref):
    slab = slab_ref[...]                                     # [8, 128] f32

    pos = slab[:, POS_L:POS_L + 3]                           # [N, 3]
    pos_t = slab[0:3, POST_L:POST_L + N_ATOMS]               # [3, N]
    h0 = slab[:, H0_L:H0_L + HIDDEN]                         # [N, H]
    w2 = slab[0:1, W2_L:W2_L + HIDDEN]                       # [1, H]
    inv_2v = slab[0:1, VOL_L:VOL_L + 1]                      # [1, 1]

    # --- node readout: SiLU (EUP) + elementwise * w2 (summed later, stacked) -
    h = h0 * jax.nn.sigmoid(h0)                              # [N, H]
    hw = h * w2                                              # [N, H]

    # --- pairwise part on per-component [N, N] planes ------------------------
    xi = pos[:, 0:1]; yi = pos[:, 1:2]; zi = pos[:, 2:3]     # [N, 1]
    xj = pos_t[0:1, :]; yj = pos_t[1:2, :]; zj = pos_t[2:3, :]   # [1, N]
    dx = xi - xj
    dy = yi - yj
    dz = zi - zj                                             # [N, N]
    d2 = dx * dx + dy * dy + dz * dz

    offdiag = (lax.broadcasted_iota(jnp.int32, (N_ATOMS, N_ATOMS), 0)
               != lax.broadcasted_iota(jnp.int32, (N_ATOMS, N_ATOMS), 1))
    d2g = jnp.where(offdiag, d2, 1.0)                        # guard the diagonal
    inv_d = lax.rsqrt(d2g)                                   # EUP (free slot)
    d = d2g * inv_d
    phi = jnp.where(offdiag, A_PAIR * jnp.exp(-ALPHA * d), 0.0)
    coef = (-ALPHA) * phi * inv_d                            # phi'(d)/d, 0 on diag

    # lane-stack the component planes: one multiply gives wx | wy | wz
    dstack = jnp.concatenate([dx, dy, dz], axis=1)           # [N, 3N]
    droll = jnp.concatenate([dy, dz, dx], axis=1)            # [N, 3N]
    coef3 = jnp.concatenate([coef, coef, coef], axis=1)      # [N, 3N]
    wstack = coef3 * dstack                                  # wx | wy | wz

    # forces: F_i = -sum_j coef[i, j] * (r_i - r_j)   (3 lane reductions)
    fx = jnp.sum(wstack[:, 0 * N_ATOMS:1 * N_ATOMS], axis=1, keepdims=True)
    fy = jnp.sum(wstack[:, 1 * N_ATOMS:2 * N_ATOMS], axis=1, keepdims=True)
    fz = jnp.sum(wstack[:, 2 * N_ATOMS:3 * N_ATOMS], axis=1, keepdims=True)
    forces = -jnp.concatenate([fx, fy, fz], axis=1)          # [N, 3]

    # single stacked plane for everything that needs a full sum:
    #   [ phi | wx*dx wy*dy wz*dz | wx*dy wy*dz wz*dx | h*w2 ]   -> [N, 88]
    plane = jnp.concatenate([phi, wstack * dstack, wstack * droll, hw], axis=1)
    colsum = jnp.sum(plane, axis=0, keepdims=True)           # one sublane reduce

    o = N_ATOMS
    e_pair = 0.5 * jnp.sum(colsum[:, 0:o], keepdims=True)    # [1, 1]
    sxx = jnp.sum(colsum[:, 1 * o:2 * o], keepdims=True)
    syy = jnp.sum(colsum[:, 2 * o:3 * o], keepdims=True)
    szz = jnp.sum(colsum[:, 3 * o:4 * o], keepdims=True)
    sxy = jnp.sum(colsum[:, 4 * o:5 * o], keepdims=True)
    syz = jnp.sum(colsum[:, 5 * o:6 * o], keepdims=True)
    sxz = jnp.sum(colsum[:, 6 * o:7 * o], keepdims=True)
    e_node = jnp.sum(colsum[:, 7 * o:7 * o + HIDDEN], keepdims=True)
    e_tot = e_node + e_pair                                  # [1, 1]

    # virial stress: sigma[a, b] = (1/2V) * sum_ij coef * d_a * d_b (symmetric)
    # NOTE: same sign convention as the surrogate reference (no extra minus).
    row0 = jnp.concatenate([sxx, sxy, sxz], axis=1)
    row1 = jnp.concatenate([sxy, syy, syz], axis=1)
    row2 = jnp.concatenate([sxz, syz, szz], axis=1)
    stress = inv_2v * jnp.concatenate([row0, row1, row2], axis=0)   # [3, 3]

    # --- single lane-dense store: forces | stress | energy | zero pad --------
    stress_pad = jnp.concatenate(
        [stress, jnp.zeros((N_ATOMS - 3, 3), jnp.float32)], axis=0)     # [N, 3]
    energy_col = jnp.concatenate(
        [e_tot, jnp.zeros((N_ATOMS - 1, 1), jnp.float32)], axis=0)      # [N, 1]
    payload = jnp.concatenate([forces, stress_pad, energy_col], axis=1)  # [N, 7]
    out_ref[...] = jnp.concatenate(
        [payload, jnp.zeros((N_ATOMS, LANES - 7), jnp.float32)], axis=1)


# ---------------------------------------------------------------------------
# Wrapper: pack one input slab (XLA), one fused launch, unpack one output slab
# ---------------------------------------------------------------------------
def _pack_inputs(positions, species, cell, params):
    # species gather + bias and det(cell) done here (tiny XLA ops), per review.
    h0 = params["w"][species] + params["b1"]                 # [N, H]
    inv_2v = 0.5 / jnp.abs(jnp.linalg.det(cell.astype(jnp.float32)))

    slab = jnp.zeros((N_ATOMS, LANES), jnp.float32)
    slab = slab.at[:, POS_L:POS_L + 3].set(positions.astype(jnp.float32))
    slab = slab.at[0:3, POST_L:POST_L + N_ATOMS].set(
        positions.T.astype(jnp.float32))
    slab = slab.at[:, H0_L:H0_L + HIDDEN].set(h0.astype(jnp.float32))
    slab = slab.at[0, W2_L:W2_L + HIDDEN].set(params["w2"][0].astype(jnp.float32))
    slab = slab.at[0, VOL_L].set(inv_2v)
    return slab


def mace_forward(positions, species, cell, params):
    """Returns (energy [1], forces [N,3], stress [1,3,3]) like MaceWrapper."""
    slab = _pack_inputs(positions, species, cell, params)

    out = pl.pallas_call(
        mace_fused_kernel,
        out_shape=jax.ShapeDtypeStruct((N_ATOMS, LANES), jnp.float32),
        in_specs=[pl.BlockSpec(memory_space=pltpu.MemorySpace.VMEM)],
        out_specs=pl.BlockSpec(memory_space=pltpu.MemorySpace.VMEM),
    )(slab)

    energy = out[0, 6:7]                      # [1]
    forces = out[:, 0:3]                      # [N, 3]
    stress = out[0:3, 3:6].reshape(1, 3, 3)   # [1, 3, 3]
    return energy, forces, stress


def init_params(key):
    k_emb, k_w1, k_b1, k_w2 = jax.random.split(key, 4)
    emb = jax.random.normal(k_emb, (N_SPECIES, HIDDEN), jnp.float32) * 0.1
    w1 = jax.random.normal(k_w1, (HIDDEN, HIDDEN), jnp.float32) * 0.1
    b1 = jax.random.normal(k_b1, (1, HIDDEN), jnp.float32) * 0.01
    w2 = jax.random.normal(k_w2, (HIDDEN, 1), jnp.float32) * 0.1
    return {
        # fold the one-hot @ emb @ w1 chain into a per-species table [S, H]
        "w": emb @ w1,
        "b1": b1,                # [1, H]
        "w2": w2.T,              # [1, H] readout row (used elementwise)
    }


# Pure-JAX reference (same surrogate math) for a correctness check.
def mace_forward_ref(positions, species, cell, params):
    h = params["w"][species] + params["b1"]
    h = h * jax.nn.sigmoid(h)
    e_node = jnp.sum(h * params["w2"])

    diff = positions[:, None, :] - positions[None, :, :]
    d2 = jnp.sum(diff * diff, axis=-1)
    eye = jnp.eye(N_ATOMS, dtype=bool)
    d = jnp.sqrt(jnp.where(eye, 1.0, d2))
    phi = jnp.where(eye, 0.0, A_PAIR * jnp.exp(-ALPHA * d))
    e_pair = 0.5 * jnp.sum(phi)
    coef = -ALPHA * phi / d
    w_pair = coef[:, :, None] * diff
    forces = -jnp.sum(w_pair, axis=1)
    virial = jnp.einsum("ija,ijb->ab", w_pair, diff)
    vol = jnp.abs(jnp.linalg.det(cell))
    stress = virial / (2.0 * vol)
    return jnp.array([e_node + e_pair]), forces, stress[None]


# TODO(synk): the real MaceWrapper loads a pretrained MACE checkpoint
# (equivariant message passing with spherical harmonics); that graph network
# has no clean synthetic Pallas translation, so a MACE-like invariant
# surrogate with the same (energy, forces, stress) interface is used.

if __name__ == "__main__":
    key = jax.random.PRNGKey(0)
    k_pos, k_sp, k_par = jax.random.split(key, 3)

    positions = jax.random.uniform(k_pos, (N_ATOMS, 3), jnp.float32,
                                   minval=0.0, maxval=4.0)
    species = jax.random.randint(k_sp, (N_ATOMS,), 0, N_SPECIES)
    cell = 5.0 * jnp.eye(3, dtype=jnp.float32)
    params = init_params(k_par)

    energy, forces, stress = jax.jit(mace_forward)(positions, species, cell,
                                                   params)
    jax.block_until_ready((energy, forces, stress))

    assert energy.shape == (1,)
    assert forces.shape == (N_ATOMS, 3)
    assert stress.shape == (1, 3, 3)

    # atol slightly loosened (5e-4) because rsqrt now replaces sqrt + divides.
    e_ref, f_ref, s_ref = mace_forward_ref(positions, species, cell, params)
    assert jnp.allclose(energy, e_ref, rtol=1e-3, atol=5e-4)
    assert jnp.allclose(forces, f_ref, rtol=1e-3, atol=5e-4)
    assert jnp.allclose(stress.reshape(1, 3, 3), s_ref, rtol=1e-3, atol=5e-4)

    print("KERNEL_OK")
</pallas_src>

<mosaic_0001>
module attributes {stable_mosaic.version = 11 : i64} {
  func.func @mace_fused_kernel(%arg0: memref<8x128xf32, #tpu.memory_space<vmem>>, %arg1: memref<8x128xf32, #tpu.memory_space<vmem>>) attributes {dimension_semantics = [], scalar_prefetch = 0 : i64, scratch_operands = 0 : i64, tpu.core_type = #tpu.core_type<tc>} {
    %c0 = arith.constant 0 : index
    %c0_0 = arith.constant 0 : index
    %0 = vector.load %arg0[%c0, %c0_0] : memref<8x128xf32, #tpu.memory_space<vmem>>, vector<8x128xf32>
    %1 = vector.extract_strided_slice %0 {offsets = [0, 0], sizes = [8, 3], strides = [1, 1]} : vector<8x128xf32> to vector<8x3xf32>
    %2 = vector.extract_strided_slice %0 {offsets = [0, 8], sizes = [3, 8], strides = [1, 1]} : vector<8x128xf32> to vector<3x8xf32>
    %3 = vector.extract_strided_slice %0 {offsets = [0, 32], sizes = [8, 32], strides = [1, 1]} : vector<8x128xf32> to vector<8x32xf32>
    %4 = vector.extract_strided_slice %0 {offsets = [0, 64], sizes = [1, 32], strides = [1, 1]} : vector<8x128xf32> to vector<1x32xf32>
    %5 = vector.extract_strided_slice %0 {offsets = [0, 96], sizes = [1, 1], strides = [1, 1]} : vector<8x128xf32> to vector<1x1xf32>
    %6 = arith.negf %3 : vector<8x32xf32>
    %7 = math.exp %6 : vector<8x32xf32>
    %cst = arith.constant 1.000000e+00 : f32
    %8 = vector.broadcast %cst : f32 to vector<8x32xf32>
    %9 = arith.addf %8, %7 : vector<8x32xf32>
    %10 = arith.divf %8, %9 : vector<8x32xf32>
    %11 = arith.mulf %3, %10 : vector<8x32xf32>
    %12 = vector.broadcast %4 : vector<1x32xf32> to vector<8x32xf32>
    %13 = arith.mulf %11, %12 : vector<8x32xf32>
    %14 = vector.extract_strided_slice %1 {offsets = [0, 0], sizes = [8, 1], strides = [1, 1]} : vector<8x3xf32> to vector<8x1xf32>
    %15 = vector.extract_strided_slice %1 {offsets = [0, 1], sizes = [8, 1], strides = [1, 1]} : vector<8x3xf32> to vector<8x1xf32>
    %16 = vector.extract_strided_slice %1 {offsets = [0, 2], sizes = [8, 1], strides = [1, 1]} : vector<8x3xf32> to vector<8x1xf32>
    %17 = vector.extract_strided_slice %2 {offsets = [0, 0], sizes = [1, 8], strides = [1, 1]} : vector<3x8xf32> to vector<1x8xf32>
    %18 = vector.extract_strided_slice %2 {offsets = [1, 0], sizes = [1, 8], strides = [1, 1]} : vector<3x8xf32> to vector<1x8xf32>
    %19 = vector.extract_strided_slice %2 {offsets = [2, 0], sizes = [1, 8], strides = [1, 1]} : vector<3x8xf32> to vector<1x8xf32>
    %20 = vector.broadcast %14 : vector<8x1xf32> to vector<8x8xf32>
    %21 = vector.broadcast %17 : vector<1x8xf32> to vector<8x8xf32>
    %22 = arith.subf %20, %21 : vector<8x8xf32>
    %23 = vector.broadcast %15 : vector<8x1xf32> to vector<8x8xf32>
    %24 = vector.broadcast %18 : vector<1x8xf32> to vector<8x8xf32>
    %25 = arith.subf %23, %24 : vector<8x8xf32>
    %26 = vector.broadcast %16 : vector<8x1xf32> to vector<8x8xf32>
    %27 = vector.broadcast %19 : vector<1x8xf32> to vector<8x8xf32>
    %28 = arith.subf %26, %27 : vector<8x8xf32>
    %29 = arith.mulf %22, %22 : vector<8x8xf32>
    %30 = arith.mulf %25, %25 : vector<8x8xf32>
    %31 = arith.addf %29, %30 : vector<8x8xf32>
    %32 = arith.mulf %28, %28 : vector<8x8xf32>
    %33 = arith.addf %31, %32 : vector<8x8xf32>
    %34 = tpu.iota {dimensions = array<i32: 0>} : vector<8x8xi32>
    %35 = tpu.iota {dimensions = array<i32: 1>} : vector<8x8xi32>
    %36 = arith.cmpi ne, %34, %35 : vector<8x8xi32>
    %cst_1 = arith.constant 1.000000e+00 : f32
    %37 = vector.broadcast %cst_1 : f32 to vector<8x8xf32>
    %38 = arith.select %36, %33, %37 : vector<8x8xi1>, vector<8x8xf32>
    %39 = math.rsqrt %38 : vector<8x8xf32>
    %40 = arith.mulf %38, %39 : vector<8x8xf32>
    %cst_2 = arith.constant -1.200000e+00 : f32
    %41 = vector.broadcast %cst_2 : f32 to vector<8x8xf32>
    %42 = arith.mulf %41, %40 : vector<8x8xf32>
    %43 = math.exp %42 : vector<8x8xf32>
    %cst_3 = arith.constant 5.000000e-01 : f32
    %44 = vector.broadcast %cst_3 : f32 to vector<8x8xf32>
    %45 = arith.mulf %44, %43 : vector<8x8xf32>
    %cst_4 = arith.constant 0.000000e+00 : f32
    %46 = vector.broadcast %cst_4 : f32 to vector<8x8xf32>
    %47 = arith.select %36, %45, %46 : vector<8x8xi1>, vector<8x8xf32>
    %cst_5 = arith.constant -1.200000e+00 : f32
    %48 = vector.broadcast %cst_5 : f32 to vector<8x8xf32>
    %49 = arith.mulf %48, %47 : vector<8x8xf32>
    %50 = arith.mulf %49, %39 : vector<8x8xf32>
    %51 = tpu.concatenate %22, %25, %28 in 1 : vector<8x8xf32>, vector<8x8xf32>, vector<8x8xf32> -> vector<8x24xf32>
    %52 = tpu.concatenate %25, %28, %22 in 1 : vector<8x8xf32>, vector<8x8xf32>, vector<8x8xf32> -> vector<8x24xf32>
    %53 = tpu.concatenate %50, %50, %50 in 1 : vector<8x8xf32>, vector<8x8xf32>, vector<8x8xf32> -> vector<8x24xf32>
    %54 = arith.mulf %53, %51 : vector<8x24xf32>
    %55 = vector.extract_strided_slice %54 {offsets = [0, 0], sizes = [8, 8], strides = [1, 1]} : vector<8x24xf32> to vector<8x8xf32>
    %cst_6 = arith.constant dense<0.000000e+00> : vector<8xf32>
    %56 = vector.multi_reduction <add>, %55, %cst_6 [1] : vector<8x8xf32> to vector<8xf32>
    %57 = vector.shape_cast %56 : vector<8xf32> to vector<8x1xf32>
    %58 = vector.extract_strided_slice %54 {offsets = [0, 8], sizes = [8, 8], strides = [1, 1]} : vector<8x24xf32> to vector<8x8xf32>
    %cst_7 = arith.constant dense<0.000000e+00> : vector<8xf32>
    %59 = vector.multi_reduction <add>, %58, %cst_7 [1] : vector<8x8xf32> to vector<8xf32>
    %60 = vector.shape_cast %59 : vector<8xf32> to vector<8x1xf32>
    %61 = vector.extract_strided_slice %54 {offsets = [0, 16], sizes = [8, 8], strides = [1, 1]} : vector<8x24xf32> to vector<8x8xf32>
    %cst_8 = arith.constant dense<0.000000e+00> : vector<8xf32>
    %62 = vector.multi_reduction <add>, %61, %cst_8 [1] : vector<8x8xf32> to vector<8xf32>
    %63 = vector.shape_cast %62 : vector<8xf32> to vector<8x1xf32>
    %64 = tpu.concatenate %57, %60, %63 in 1 : vector<8x1xf32>, vector<8x1xf32>, vector<8x1xf32> -> vector<8x3xf32>
    %cst_9 = arith.constant 0.000000e+00 : f32
    %65 = vector.broadcast %cst_9 : f32 to vector<8x3xf32>
    %66 = arith.subf %65, %64 : vector<8x3xf32>
    %67 = arith.mulf %54, %51 : vector<8x24xf32>
    %68 = arith.mulf %54, %52 : vector<8x24xf32>
    %69 = tpu.concatenate %47, %67, %68, %13 in 1 : vector<8x8xf32>, vector<8x24xf32>, vector<8x24xf32>, vector<8x32xf32> -> vector<8x88xf32>
    %cst_10 = arith.constant dense<0.000000e+00> : vector<88xf32>
    %70 = vector.multi_reduction <add>, %69, %cst_10 [0] : vector<8x88xf32> to vector<88xf32>
    %71 = vector.shape_cast %70 : vector<88xf32> to vector<1x88xf32>
    %72 = vector.extract_strided_slice %71 {offsets = [0, 0], sizes = [1, 8], strides = [1, 1]} : vector<1x88xf32> to vector<1x8xf32>
    %73 = vector.shape_cast %72 : vector<1x8xf32> to vector<1x1x8xf32>
    %cst_11 = arith.constant dense<0.000000e+00> : vector<1xf32>
    %74 = vector.multi_reduction <add>, %73, %cst_11 [1, 2] : vector<1x1x8xf32> to vector<1xf32>
    %75 = vector.shape_cast %74 : vector<1xf32> to vector<1x1x1xf32>
    %76 = vector.extract %75[0, 0, 0] : f32 from vector<1x1x1xf32>
    %77 = vector.broadcast %76 : f32 to vector<1x1xf32>
    %cst_12 = arith.constant 5.000000e-01 : f32
    %78 = vector.broadcast %cst_12 : f32 to vector<1x1xf32>
    %79 = arith.mulf %78, %77 : vector<1x1xf32>
    %80 = vector.extract_strided_slice %71 {offsets = [0, 8], sizes = [1, 8], strides = [1, 1]} : vector<1x88xf32> to vector<1x8xf32>
    %81 = vector.shape_cast %80 : vector<1x8xf32> to vector<1x1x8xf32>
    %cst_13 = arith.constant dense<0.000000e+00> : vector<1xf32>
    %82 = vector.multi_reduction <add>, %81, %cst_13 [1, 2] : vector<1x1x8xf32> to vector<1xf32>
    %83 = vector.shape_cast %82 : vector<1xf32> to vector<1x1x1xf32>
    %84 = vector.extract %83[0, 0, 0] : f32 from vector<1x1x1xf32>
    %85 = vector.broadcast %84 : f32 to vector<1x1xf32>
    %86 = vector.extract_strided_slice %71 {offsets = [0, 16], sizes = [1, 8], strides = [1, 1]} : vector<1x88xf32> to vector<1x8xf32>
    %87 = vector.shape_cast %86 : vector<1x8xf32> to vector<1x1x8xf32>
    %cst_14 = arith.constant dense<0.000000e+00> : vector<1xf32>
    %88 = vector.multi_reduction <add>, %87, %cst_14 [1, 2] : vector<1x1x8xf32> to vector<1xf32>
    %89 = vector.shape_cast %88 : vector<1xf32> to vector<1x1x1xf32>
    %90 = vector.extract %89[0, 0, 0] : f32 from vector<1x1x1xf32>
    %91 = vector.broadcast %90 : f32 to vector<1x1xf32>
    %92 = vector.extract_strided_slice %71 {offsets = [0, 24], sizes = [1, 8], strides = [1, 1]} : vector<1x88xf32> to vector<1x8xf32>
    %93 = vector.shape_cast %92 : vector<1x8xf32> to vector<1x1x8xf32>
    %cst_15 = arith.constant dense<0.000000e+00> : vector<1xf32>
    %94 = vector.multi_reduction <add>, %93, %cst_15 [1, 2] : vector<1x1x8xf32> to vector<1xf32>
    %95 = vector.shape_cast %94 : vector<1xf32> to vector<1x1x1xf32>
    %96 = vector.extract %95[0, 0, 0] : f32 from vector<1x1x1xf32>
    %97 = vector.broadcast %96 : f32 to vector<1x1xf32>
    %98 = vector.extract_strided_slice %71 {offsets = [0, 32], sizes = [1, 8], strides = [1, 1]} : vector<1x88xf32> to vector<1x8xf32>
    %99 = vector.shape_cast %98 : vector<1x8xf32> to vector<1x1x8xf32>
    %cst_16 = arith.constant dense<0.000000e+00> : vector<1xf32>
    %100 = vector.multi_reduction <add>, %99, %cst_16 [1, 2] : vector<1x1x8xf32> to vector<1xf32>
    %101 = vector.shape_cast %100 : vector<1xf32> to vector<1x1x1xf32>
    %102 = vector.extract %101[0, 0, 0] : f32 from vector<1x1x1xf32>
    %103 = vector.broadcast %102 : f32 to vector<1x1xf32>
    %104 = vector.extract_strided_slice %71 {offsets = [0, 40], sizes = [1, 8], strides = [1, 1]} : vector<1x88xf32> to vector<1x8xf32>
    %105 = vector.shape_cast %104 : vector<1x8xf32> to vector<1x1x8xf32>
    %cst_17 = arith.constant dense<0.000000e+00> : vector<1xf32>
    %106 = vector.multi_reduction <add>, %105, %cst_17 [1, 2] : vector<1x1x8xf32> to vector<1xf32>
    %107 = vector.shape_cast %106 : vector<1xf32> to vector<1x1x1xf32>
    %108 = vector.extract %107[0, 0, 0] : f32 from vector<1x1x1xf32>
    %109 = vector.broadcast %108 : f32 to vector<1x1xf32>
    %110 = vector.extract_strided_slice %71 {offsets = [0, 48], sizes = [1, 8], strides = [1, 1]} : vector<1x88xf32> to vector<1x8xf32>
    %111 = vector.shape_cast %110 : vector<1x8xf32> to vector<1x1x8xf32>
    %cst_18 = arith.constant dense<0.000000e+00> : vector<1xf32>
    %112 = vector.multi_reduction <add>, %111, %cst_18 [1, 2] : vector<1x1x8xf32> to vector<1xf32>
    %113 = vector.shape_cast %112 : vector<1xf32> to vector<1x1x1xf32>
    %114 = vector.extract %113[0, 0, 0] : f32 from vector<1x1x1xf32>
    %115 = vector.broadcast %114 : f32 to vector<1x1xf32>
    %116 = vector.extract_strided_slice %71 {offsets = [0, 56], sizes = [1, 32], strides = [1, 1]} : vector<1x88xf32> to vector<1x32xf32>
    %117 = vector.shape_cast %116 : vector<1x32xf32> to vector<1x1x32xf32>
    %cst_19 = arith.constant dense<0.000000e+00> : vector<1xf32>
    %118 = vector.multi_reduction <add>, %117, %cst_19 [1, 2] : vector<1x1x32xf32> to vector<1xf32>
    %119 = vector.shape_cast %118 : vector<1xf32> to vector<1x1x1xf32>
    %120 = vector.extract %119[0, 0, 0] : f32 from vector<1x1x1xf32>
    %121 = vector.broadcast %120 : f32 to vector<1x1xf32>
    %122 = arith.addf %121, %79 : vector<1x1xf32>
    %123 = tpu.concatenate %85, %103, %115 in 1 : vector<1x1xf32>, vector<1x1xf32>, vector<1x1xf32> -> vector<1x3xf32>
    %124 = tpu.concatenate %103, %91, %109 in 1 : vector<1x1xf32>, vector<1x1xf32>, vector<1x1xf32> -> vector<1x3xf32>
    %125 = tpu.concatenate %115, %109, %97 in 1 : vector<1x1xf32>, vector<1x1xf32>, vector<1x1xf32> -> vector<1x3xf32>
    %126 = tpu.concatenate %123, %124, %125 in 0 : vector<1x3xf32>, vector<1x3xf32>, vector<1x3xf32> -> vector<3x3xf32>
    %127 = vector.broadcast %5 : vector<1x1xf32> to vector<3x3xf32>
    %128 = arith.mulf %127, %126 : vector<3x3xf32>
    %cst_20 = arith.constant 0.000000e+00 : f32
    %129 = vector.broadcast %cst_20 : f32 to vector<5x3xf32>
    %130 = tpu.concatenate %128, %129 in 0 : vector<3x3xf32>, vector<5x3xf32> -> vector<8x3xf32>
    %cst_21 = arith.constant 0.000000e+00 : f32
    %131 = vector.broadcast %cst_21 : f32 to vector<7x1xf32>
    %132 = tpu.concatenate %122, %131 in 0 : vector<1x1xf32>, vector<7x1xf32> -> vector<8x1xf32>
    %133 = tpu.concatenate %66, %130, %132 in 1 : vector<8x3xf32>, vector<8x3xf32>, vector<8x1xf32> -> vector<8x7xf32>
    %cst_22 = arith.constant 0.000000e+00 : f32
    %134 = vector.broadcast %cst_22 : f32 to vector<8x121xf32>
    %135 = tpu.concatenate %133, %134 in 1 : vector<8x7xf32>, vector<8x121xf32> -> vector<8x128xf32>
    %c0_23 = arith.constant 0 : index
    %c0_24 = arith.constant 0 : index
    %136 = vector.load %arg1[%c0_23, %c0_24] : memref<8x128xf32, #tpu.memory_space<vmem>>, vector<8x128xf32>
    tpu.vector_store %arg1[%c0_23, %c0_24], %135 {strides = array<i32>} : memref<8x128xf32, #tpu.memory_space<vmem>>, vector<8x128xf32>,
    return
  }
}

</mosaic_0001>

<bundles_post_ra>
// kernel: mace_forward.1
= control target key start
LH: loop header
LB: loop body
LE: loop exit
PB: predicated region body
PF: predicated region fallthrough
CT: control target
= control target key end

     0   :  { %v357_v0 = vmov 0   ;;  %v358_v2 = vmov 2   ;;  %v359_v3 = vmov 1   ;;  %v16_v4 = vlaneseq  ;;  %s361_s8 = smov 8   ;;  %s362_s9 = smov 96   ;;  %s445_s0 = inlined_call_operand.vmem [shape: f32[8,128], index: 0, kind: input, shape index: {}]   ;;  %s446_s1 = inlined_call_operand.vmem [shape: f32[8,128], index: 1, kind: output, shape index: {}]  }
   0x1   :  { %345 = vset.pattern.permute.xlu0 %v357_v0  ;;  %v386_v1 = vld [vmem:[%s445_s0] sm:$0xff]  ;;  %347 = vset.pattern.permute.xlu1 %v358_v2  ;;  %s360_s0 = smov 120   ;;  %s363_s10 = smov 16   ;;  %vm81_vm1 = vcmask 64512   ;;  %vm83_vm2 = vcmask 130048   ;;  %vm140_vm3 = vcmask 261120  }
   0x2   :  { %27 = vperm.xlu0 %345, %v386_v1   ;;  %41 = vperm.xlu1 %347, %v386_v1   ;;  %v17_v5 = vshrl.u32 %v16_v4, 7  ;;  %v57_v6 = vand.u32 127, %v16_v4  ;;  %v310_v35 = vmul.f32 -1.442695, %v386_v1  ;;  %s364_s11 = smov 32   ;;  %s365_s12 = smov 24  }
   0x3   :  { %vm142_vm4 = vcmask 457728   ;;  %vm144_vm5 = vcmask 719872   ;;  %s366_s13 = smov 104   ;;  %s367_s14 = smov 80   ;;  %vm152_vm6 = vcmask 57344   ;;  %vm120_vm7 = vcmask 7168  }
   0x4   :  { %vm58_vm0 = vcmp.ne.s32.totalorder %v17_v5, %v57_v6  ;;  %v18_v7 = vsub.s32 0, %v17_v5  ;;  %v46_v8 = vsub.s32 2, %v17_v5  ;;  %v37_v9 = vsub.s32 1, %v17_v5  ;;  %s368_s15 = smov 112   ;;  %s369_s16 = smov 88  }
   0x5   :  { %s370_s17 = smov 72   ;;  %vm253_vm8 = vcmask 253952   ;;  %vm122_vm9 = vcmask 15360   ;;  %vm278_vm10 = vcmask 1040384   ;;  %vm280_vm11 = vcmask 1041408   ;;  %s371_s27 = smov 3  }
   0x6   :  { %346 = vset.pattern.permute.xlu0 %v359_v3  ;;  %v19_v11 = vrot.slane %v386_v1, %v18_v7  ;;  %v47_v12 = vrot.slane %v386_v1, %v46_v8  ;;  %v38_v14 = vrot.slane %v386_v1, %v37_v9  ;;  %vm288_vm12 = vcmask 1042432   ;;  %s372_s28 = smov 6  }
   0x7   :  { %32 = vperm.xlu0 %346, %v386_v1   ;;  %vm299_vm13 = vcmask 23552   ;;  %vm301_vm14 = vcmask 48128   ;;  %vm303_vm15 = vcmask 56320  }
   0xb   :  { %348 = vset.pattern.permute.xlu0 %v358_v2 }
  0x81   :  { %v28_v10 = vpop.permute.xlu0 %27  ;;  %v42_v13 = vpop.permute.xlu1 %41 }
  0x82   :  { %v30_v15 = vsub.f32 %v28_v10, %v19_v11  ;;  %v48_v16 = vsub.f32 %v42_v13, %v47_v12 }
  0x84   :  { %v49_v19 = vmul.f32 %v30_v15, %v30_v15  ;;  %v52_v21 = vmul.f32 %v48_v16, %v48_v16 }
  0x86   :  { %v33_v17 = vpop.permute.xlu0 %32 }
  0x87   :  { %v39_v18 = vsub.f32 %v33_v17, %v38_v14 }
  0x89   :  { %v50_v20 = vmul.f32 %v39_v18, %v39_v18 }
  0x8b   :  { %v51_v22 = vadd.f32 %v50_v20, %v49_v19 }
  0x8d   :  { %v53_v23 = vadd.f32 %v52_v21, %v51_v22 }
  0x8f   :  { %60 = vrot.lane.b32.xlu1 %v53_v23, %s360_s0 }
  0x93   :  { %74 = vrot.lane.b32.xlu1 %v30_v15, %s360_s0 }
  0x97   :  { %78 = vrot.lane.b32.xlu1 %v48_v16, %s361_s8 }
  0x9b   :  { %86 = vrot.lane.b32.xlu1 %v39_v18, %s360_s0 }
  0x9f   :  { %21 = vrot.lane.b32.xlu1 %v19_v11, %s362_s9 }
 0x101   :  { %v61_v24 = vpop.permute.xlu1 %60 }
 0x102   :  { %v63_v25 = vsel %vm58_vm0, %v61_v24, 1.0 }
 0x103   :  { %349 = vrsqrt.f32 %v63_v25 }
 0x105   :  { %v75_v38 = vpop.permute.xlu1 %74 }
 0x106   :  { %v82_v43 = vsel %vm81_vm1, %v75_v38, %v39_v18 }
 0x109   :  { %v79_v39 = vpop.permute.xlu1 %78 }
 0x10a   :  { %v84_v46 = vsel %vm83_vm2, %v82_v43, %v79_v39 }
 0x10d   :  { %v350_v26 = vpop.eup %349  ;;  %v87_v42 = vpop.permute.xlu1 %86 }
 0x10e   :  { %v65_v27 = vmul.f32 %v350_v26, %v63_v25  ;;  %v92_v51 = vsel %vm81_vm1, %v87_v42, %v48_v16 }
 0x110   :  { %v66_v28 = vmul.f32 -1.2, %v65_v27 }
 0x111   :  { %v22_v50 = vpop.permute.xlu1 %21 }
 0x112   :  { %v67_v29 = vmul.f32 1.442695, %v66_v28 }
 0x114   :  { %351 = vpow2.f32 %v67_v29 }
 0x115   :  { %353 = vpow2.f32 %v310_v35 }
 0x11e   :  { %v352_v30 = vpop.eup %351 }
 0x11f   :  { %v69_v31 = vmul.f32 0.5, %v352_v30  ;;  %v354_v36 = vpop.eup %353 }
 0x120   :  { %v12_v37 = vadd.f32 1.0, %v354_v36 }
 0x121   :  { %v70_v32 = vsel %vm58_vm0, %v69_v31, 0.0 }
 0x122   :  { %v71_v33 = vmul.f32 -1.2, %v70_v32  ;;  %355 = vrcp.f32 %v12_v37 }
 0x124   :  { %v72_v34 = vmul.f32 %v350_v26, %v71_v33 }
 0x126   :  { %95 = vrot.lane.b32.xlu0 %v72_v34, %s361_s8 }
 0x12a   :  { %98 = vrot.lane.b32.xlu0 %v72_v34, %s363_s10 }
 0x12c   :  { %v356_v41 = vpop.eup %355 }
 0x12d   :  { %v15_v49 = vmul.f32 %v356_v41, %v386_v1 }
 0x12e   :  { %89 = vrot.lane.b32.xlu0 %v30_v15, %s361_s8 }
 0x12f   :  { %v24_v56 = vmul.f32 %v22_v50, %v15_v49 }
 0x198   :  { %v96_v40 = vpop.permute.xlu0 %95 }
 0x199   :  { %v101_v44 = vsel %vm81_vm1, %v72_v34, %v96_v40 }
 0x19c   :  { %v99_v45 = vpop.permute.xlu0 %98 }
 0x19d   :  { %v102_v47 = vsel %vm83_vm2, %v101_v44, %v99_v45 }
 0x19e   :  { %v103_v48 = vmul.f32 %v102_v47, %v84_v46 }
 0x1a0   :  { %v90_v52 = vpop.permute.xlu0 %89  ;;  %v125_v53 = vmul.f32 %v103_v48, %v84_v46  ;;  %v104_v57 = vsel %vm81_vm1, %v103_v48, 0.0 }
 0x1a1   :  { %v93_v54 = vsel %vm83_vm2, %v92_v51, %v90_v52 }
 0x1a2   :  { %v126_v55 = vmul.f32 %v103_v48, %v93_v54  ;;  %128 = vrot.lane.b32.xlu0 %v125_v53, %s361_s8 }
 0x1a4   :  { %132 = vrot.lane.b32.xlu1 %v126_v55, %s364_s11 }
 0x1a6   :  { %136 = vrot.lane.b32.xlu0 %v24_v56, %s365_s12 }
 0x1aa   :  { %108 = vrot.lane.b32.xlu0 %v103_v48, %s360_s0 }
 0x1c8   :  { %105 = vadd.xlane.f32.xlu1 %v104_v57 }
 0x214   :  { %v129_v58 = vpop.permute.xlu0 %128 }
 0x215   :  { %v139_v59 = vsel %vm81_vm1, %v70_v32, %v129_v58 }
 0x216   :  { %v133_v60 = vpop.permute.xlu1 %132 }
 0x217   :  { %v141_v61 = vsel %vm140_vm3, %v139_v59, %v133_v60 }
 0x218   :  { %v137_v62 = vpop.permute.xlu0 %136 }
 0x219   :  { %v143_v63 = vsel %vm142_vm4, %v141_v61, %v137_v62 }
 0x21a   :  { %v145_v0 = vsel %vm144_vm5, %v143_v63, 0.0 }
 0x21b   :  { %v146_v2 = vrot.slane %v145_v0, 4 }
 0x21c   :  { %v109_v3 = vpop.permute.xlu0 %108 }
 0x21d   :  { %v147_v4 = vadd.f32 %v146_v2, %v145_v0  ;;  %v111_v5 = vsel %vm81_vm1, %v109_v3, 0.0 }
 0x21e   :  { %112 = vadd.xlane.f32.xlu0 %v111_v5 }
 0x21f   :  { %v148_v6 = vrot.slane %v147_v4, 2 }
 0x221   :  { %v149_v7 = vadd.f32 %v148_v6, %v147_v4 }
 0x223   :  { %v150_v8 = vrot.slane %v149_v7, 1 }
 0x225   :  { %v151_v9 = vadd.f32 %v150_v8, %v149_v7 }
 0x227   :  { %166 = vrot.lane.b32.xlu1 %v151_v9, %s360_s0  ;;  %v153_v10 = vsel %vm152_vm6, %v151_v9, 0.0 }
 0x22b   :  { %194 = vrot.lane.b32.xlu1 %v151_v9, %s366_s13 }
 0x22f   :  { %208 = vrot.lane.b32.xlu1 %v151_v9, %s362_s9 }
 0x233   :  { %236 = vrot.lane.b32.xlu1 %v151_v9, %s367_s14 }
 0x234   :  { %180 = vrot.lane.b32.xlu0 %v151_v9, %s368_s15 }
 0x237   :  { %114 = vrot.lane.b32.xlu1 %v103_v48, %s368_s15 }
 0x238   :  { %222 = vrot.lane.b32.xlu0 %v151_v9, %s369_s16 }
 0x23c   :  { %250 = vrot.lane.b32.xlu0 %v151_v9, %s370_s17 }
 0x255   :  { %v106_v11 = vpop.xlane.xlu1 %105 }
 0x25b   :  { %154 = vadd.xlane.f32.xlu1 %v153_v10 }
 0x299   :  { %v167_v12 = vpop.permute.xlu1 %166 }
 0x29a   :  { %v169_v21 = vsel %vm152_vm6, %v167_v12, 0.0 }
 0x29d   :  { %v195_v13 = vpop.permute.xlu1 %194 }
 0x29e   :  { %v197_v14 = vsel %vm152_vm6, %v195_v13, 0.0 }
 0x29f   :  { %198 = vadd.xlane.f32.xlu1 %v197_v14 }
 0x2a1   :  { %v209_v15 = vpop.permute.xlu1 %208 }
 0x2a2   :  { %v211_v26 = vsel %vm152_vm6, %v209_v15, 0.0 }
 0x2a5   :  { %v237_v16 = vpop.permute.xlu1 %236 }
 0x2a6   :  { %v239_v29 = vsel %vm152_vm6, %v237_v16, 0.0 }
 0x2a9   :  { %v115_v17 = vpop.permute.xlu1 %114 }
 0x2aa   :  { %v117_v18 = vsel %vm81_vm1, %v115_v17, 0.0 }
 0x2ab   :  { %118 = vadd.xlane.f32.xlu0 %v117_v18  ;;  %v113_v19 = vpop.xlane.xlu0 %112 }
 0x2ac   :  { %v121_v20 = vsel %vm120_vm7, %v106_v11, %v113_v19 }
 0x2af   :  { %170 = vadd.xlane.f32.xlu0 %v169_v21  ;;  %v181_v22 = vpop.permute.xlu0 %180 }
 0x2b0   :  { %v183_v23 = vsel %vm152_vm6, %v181_v22, 0.0 }
 0x2b3   :  { %184 = vadd.xlane.f32.xlu0 %v183_v23  ;;  %v223_v24 = vpop.permute.xlu0 %222 }
 0x2b4   :  { %v225_v25 = vsel %vm152_vm6, %v223_v24, 0.0 }
 0x2b5   :  { %226 = vadd.xlane.f32.xlu1 %v225_v25 }
 0x2b7   :  { %212 = vadd.xlane.f32.xlu0 %v211_v26  ;;  %v251_v27 = vpop.permute.xlu0 %250 }
 0x2b8   :  { %v254_v28 = vsel %vm253_vm8, %v251_v27, 0.0 }
 0x2b9   :  { %255 = vadd.xlane.f32.xlu1 %v254_v28 }
 0x2bb   :  { %240 = vadd.xlane.f32.xlu0 %v239_v29 }
 0x2d1   :  { %282 = vrot.lane.b32.xlu0 %v386_v1, %s364_s11 }
 0x2e8   :  { %v155_v30 = vpop.xlane.xlu1 %154 }
 0x2e9   :  { %v156_v31 = vrot.slane %v155_v30, 4 }
 0x2eb   :  { %v157_v32 = vadd.f32 %v156_v31, %v155_v30 }
 0x2ed   :  { %v158_v33 = vrot.slane %v157_v32, 2 }
 0x2ef   :  { %v159_v34 = vadd.f32 %v158_v33, %v157_v32 }
 0x2f1   :  { %v160_v35 = vrot.slane %v159_v34, 1 }
 0x2f3   :  { %v161_v36 = vadd.f32 %v160_v35, %v159_v34 }
 0x2f5   :  { %311 = vpush %v161_v36 }
 0x326   :  { %s430_s18 = spop %311 }
 0x32c   :  { %v199_v37 = vpop.xlane.xlu1 %198 }
 0x32d   :  { %v200_v38 = vrot.slane %v199_v37, 4 }
 0x32f   :  { %v201_v41 = vadd.f32 %v200_v38, %v199_v37  ;;  %v163_v38 = vstv %s430_s18 }
 0x331   :  { %v202_v1 = vrot.slane %v201_v41, 2 }
 0x333   :  { %v203_v53 = vadd.f32 %v202_v1, %v201_v41  ;;  %v164_v1 = vmul.f32 0.5, %v163_v38 }
 0x335   :  { %v204_v2 = vrot.slane %v203_v53, 1 }
 0x337   :  { %v205_v14 = vadd.f32 %v204_v2, %v203_v53 }
 0x338   :  { %v119_v39 = vpop.xlane.xlu0 %118 }
 0x339   :  { %v428_v40 = vsel %vm122_vm9, %v121_v20, %v119_v39 }
 0x33c   :  { %v171_v42 = vpop.xlane.xlu0 %170 }
 0x33d   :  { %v172_v43 = vrot.slane %v171_v42, 4 }
 0x33f   :  { %v173_v44 = vadd.f32 %v172_v43, %v171_v42 }
 0x340   :  { %v185_v45 = vpop.xlane.xlu0 %184 }
 0x341   :  { %v174_v46 = vrot.slane %v173_v44, 2  ;;  %v186_v47 = vrot.slane %v185_v45, 4 }
 0x342   :  { %v227_v48 = vpop.xlane.xlu1 %226 }
 0x343   :  { %v187_v49 = vadd.f32 %v186_v47, %v185_v45  ;;  %v228_v50 = vrot.slane %v227_v48, 4  ;;  %v175_v51 = vadd.f32 %v174_v46, %v173_v44 }
 0x344   :  { %v213_v52 = vpop.xlane.xlu0 %212 }
 0x345   :  { %v188_v54 = vrot.slane %v187_v49, 2  ;;  %v229_v55 = vadd.f32 %v228_v50, %v227_v48  ;;  %v214_v56 = vrot.slane %v213_v52, 4  ;;  %v176_v57 = vrot.slane %v175_v51, 1 }
 0x346   :  { %v256_v58 = vpop.xlane.xlu1 %255  ;;  %v124_v50 = vsub.f32 0.0, %v428_v40 }
 0x347   :  { %v230_v59 = vrot.slane %v229_v55, 2  ;;  %v215_v60 = vadd.f32 %v214_v56, %v213_v52  ;;  %v257_v61 = vrot.slane %v256_v58, 4  ;;  %v177_v62 = vadd.f32 %v176_v57, %v175_v51 }
 0x348   :  { %v241_v63 = vpop.xlane.xlu0 %240  ;;  %v189_v0 = vadd.f32 %v188_v54, %v187_v49 }
 0x349   :  { %v216_v3 = vrot.slane %v215_v60, 2  ;;  %v258_v4 = vadd.f32 %v257_v61, %v256_v58  ;;  %v242_v5 = vrot.slane %v241_v63, 4  ;;  %313 = vpush %v177_v62  ;;  %v231_v6 = vadd.f32 %v230_v59, %v229_v55 }
 0x34a   :  { %v190_v7 = vrot.slane %v189_v0, 1 }
 0x34b   :  { %v259_v8 = vrot.slane %v258_v4, 2  ;;  %v243_v9 = vadd.f32 %v242_v5, %v241_v63  ;;  %v217_v10 = vadd.f32 %v216_v3, %v215_v60  ;;  %v232_v12 = vrot.slane %v231_v6, 1 }
 0x34c   :  { %v191_v11 = vadd.f32 %v190_v7, %v189_v0  ;;  %v283_v24 = vpop.permute.xlu0 %282 }
 0x34d   :  { %v244_v13 = vrot.slane %v243_v9, 2  ;;  %v218_v15 = vrot.slane %v217_v10, 1  ;;  %v260_v16 = vadd.f32 %v259_v8, %v258_v4  ;;  %v233_v19 = vadd.f32 %v232_v12, %v231_v6 }
 0x34e   :  { %315 = vpush %v191_v11 }
 0x34f   :  { %317 = vpush %v205_v14  ;;  %v219_v17 = vadd.f32 %v218_v15, %v217_v10  ;;  %v245_v18 = vadd.f32 %v244_v13, %v243_v9  ;;  %v261_v20 = vrot.slane %v260_v16, 1 }
 0x351   :  { %319 = vpush %v219_v17  ;;  %v246_v21 = vrot.slane %v245_v18, 1  ;;  %v262_v23 = vadd.f32 %v261_v20, %v260_v16 }
 0x352   :  { %321 = vpush %v233_v19 }
 0x353   :  { %v247_v22 = vadd.f32 %v246_v21, %v245_v18 }
 0x355   :  { %323 = vpush %v247_v22 }
 0x356   :  { %325 = vpush %v262_v23 }
 0x357   :  { %327 = vpush %v283_v24 }
 0x37a   :  { %s314_s19 = spop %313 }
 0x37b   :  { %v179_v30 = vstv %s314_s19 }
 0x37f   :  { %s316_s20 = spop %315 }
 0x380   :  { %s318_s21 = spop %317  ;;  %v193_v25 = vstv %s316_s20 }
 0x381   :  { %v207_v34 = vstv %s318_s21 }
 0x382   :  { %s320_s22 = spop %319 }
 0x383   :  { %v221_v26 = vstv %s320_s22  ;;  %s322_s23 = spop %321 }
 0x384   :  { %v268_v27 = vsel %vm120_vm7, %v221_v26, %v193_v25  ;;  %v235_v28 = vstv %s322_s23  ;;  %v266_v31 = vsel %vm120_vm7, %v179_v30, %v221_v26 }
 0x385   :  { %v269_v29 = vsel %vm122_vm9, %v268_v27, %v235_v28 }
 0x386   :  { %s324_s24 = spop %323  ;;  %v273_v32 = vrot.slane %v269_v29, 7 }
 0x387   :  { %v249_v33 = vstv %s324_s24  ;;  %s326_s25 = spop %325 }
 0x388   :  { %v267_v35 = vsel %vm122_vm9, %v266_v31, %v249_v33  ;;  %v270_v36 = vsel %vm120_vm7, %v249_v33, %v235_v28  ;;  %s328_s26 = spop %327  ;;  %v264_v43 = vstv %s326_s25 }
 0x389   :  { %v271_v37 = vsel %vm122_vm9, %v270_v36, %v207_v34  ;;  %v285_v41 = vstv %s328_s26  ;;  %v279_v42 = vsel %vm278_vm10, %v267_v35, %v273_v32  ;;  %v265_v46 = vadd.f32 %v264_v43, %v164_v1 }
 0x38a   :  { %v276_v39 = vrot.slane %v271_v37, 6 }
 0x38b   :  { %v290_v48 = vsel %vm278_vm10, %v265_v46, 0.0 }
 0x38c   :  { %v281_v44 = vsel %vm280_vm11, %v279_v42, %v276_v39 }
 0x38d   :  { %v287_v45 = vmul.f32 %v285_v41, %v281_v44 }
 0x38f   :  { %v289_v47 = vsel %vm288_vm12, %v287_v45, 0.0 }
 0x390   :  { %292 = vrot.lane.b32.xlu1 %v289_v47, %s371_s27 }
 0x394   :  { %296 = vrot.lane.b32.xlu1 %v290_v48, %s372_s28 }
 0x402   :  { %v293_v49 = vpop.permute.xlu1 %292 }
 0x403   :  { %v300_v51 = vsel %vm299_vm13, %v124_v50, %v293_v49 }
 0x406   :  { %v297_v52 = vpop.permute.xlu1 %296 }
 0x407   :  { %v302_v53 = vsel %vm301_vm14, %v300_v51, %v297_v52 }
 0x408   :  { %v304_v54 = vsel %vm303_vm15, %v302_v53, 0.0 }
 0x409   :  { %305 = vst [vmem:[%s446_s1] sm:$0xff] %v304_v54 }

</bundles_post_ra>
